<compile_context>
chip_gen: v7x
topology: tpu7x:2x2x1
jax: 0.10.0
libtpu: 0.0.40
codegen_flags: <defaults>
</compile_context>

<pallas_src>
import functools

import jax
import jax.numpy as jnp
from jax import lax
from jax.experimental import pallas as pl
from jax.experimental.pallas import tpu as pltpu


def convpass_kernel(x_ref, w1_ref, b1_ref, w2_ref, b2r_ref, wr_ref, o_ref,
                    *, W, KW1, KW2, res_shift):
    """One image per grid step.

    x_ref : (1, Cin_p, HWp) f32   lane-flattened, channel/lane-padded NCHW image
    w1_ref: (KH1*KW1, Cout, Cin_p) bf16   per-tap conv1 weights
    w2_ref: (KH2*KW2, Cout, Cout)  bf16   per-tap conv2 weights
    wr_ref: (Cout, Cin_p)          bf16   1x1 residual conv
    b1_ref: (Cout, 1) f32;  b2r_ref: (Cout, 1) f32 (= conv2 bias + residual bias)
    o_ref : (1, Cout, HWp) f32    valid region = top-left, cropped by wrapper
    """
    Lp = x_ref.shape[-1]
    cout = w1_ref.shape[1]
    xi = x_ref[0]                                   # (Cin_p, Lp) f32

    def tap(a, off):
        # Bring flat position `off` to lane 0 with an XLU lane rotate; the
        # circular wrap only pollutes positions the wrapper's crop discards.
        # Roll on 32-bit data, cast to bf16 right at the MXU.
        if off:
            a = pltpu.roll(a, shift=Lp - off, axis=1)
        return a.astype(jnp.bfloat16)

    # ---- conv1: per-tap (Cout,Cin_p)x(Cin_p,Lp) matmuls, f32 accumulation,
    # bias folded into the accumulator init (no per-image re-broadcast).
    h = jnp.broadcast_to(b1_ref[...], (cout, Lp))
    for t in range(w1_ref.shape[0]):                # 9 taps, statically unrolled
        off = (t // KW1) * W + (t % KW1)
        h = h + jnp.dot(w1_ref[t], tap(xi, off),
                        preferred_element_type=jnp.float32)
    h = jnp.maximum(h, 0.0)                         # ReLU between the two convs

    # ---- residual 1x1 conv at the center-cropped positions (single rotate);
    # conv2 + residual biases were pre-summed in the wrapper.
    acc = jnp.dot(wr_ref[...], tap(xi, res_shift),
                  preferred_element_type=jnp.float32) + b2r_ref[...]

    # ---- conv2 accumulated directly on top of the residual (no x2 buffer).
    for t in range(w2_ref.shape[0]):                # 9 taps, statically unrolled
        off = (t // KW2) * W + (t % KW2)
        acc = acc + jnp.dot(w2_ref[t], tap(h, off),
                            preferred_element_type=jnp.float32)

    # ---- output ReLU; lane-dense, 128-aligned, unmasked store.
    o_ref[0] = jnp.maximum(acc, 0.0)


@jax.jit
def conv_pass_forward(x, w1, b1, w2, b2, wr, br):
    """x: (N, Cin, H, W) NCHW f32.  Weights in PyTorch layout:
    w1: (Cout, Cin, KH1, KW1), w2: (Cout, Cout, KH2, KW2), wr: (Cout, Cin),
    biases: (Cout,).  Returns (N, Cout, H2, W2) NCHW f32."""
    f32, bf16 = jnp.float32, jnp.bfloat16
    N, Cin, H, W = x.shape
    Cout, _, KH1, KW1 = w1.shape
    KH2, KW2 = w2.shape[2], w2.shape[3]
    H2 = H - (KH1 - 1) - (KH2 - 1)
    W2 = W - (KW1 - 1) - (KW2 - 1)
    HW = H * W
    HWp = ((HW + 127) // 128) * 128          # lane-pad flat spatial to 128
    Cin_p = ((Cin + 7) // 8) * 8             # pad channels to the sublane tile
    # NOTE: Cout not a multiple of 8 is still correct, just layout-padded.

    # NCHW consumed directly: channels on sublanes, flat H*W on the lane axis.
    xf = jnp.pad(x.astype(f32).reshape(N, Cin, HW),
                 ((0, 0), (0, Cin_p - Cin), (0, HWp - HW)))

    # Per-tap weight stacks (tap, Cout, C), pre-cast to bf16 (MXU operands).
    w1t = jnp.pad(w1.astype(bf16), ((0, 0), (0, Cin_p - Cin), (0, 0), (0, 0)))
    w1t = jnp.transpose(w1t, (2, 3, 0, 1)).reshape(KH1 * KW1, Cout, Cin_p)
    w2t = jnp.transpose(w2.astype(bf16), (2, 3, 0, 1)).reshape(
        KH2 * KW2, Cout, Cout)
    wrm = jnp.pad(wr.astype(bf16), ((0, 0), (0, Cin_p - Cin)))
    b1c = b1.astype(f32).reshape(Cout, 1)
    b2rc = (b2.astype(f32) + br.astype(f32)).reshape(Cout, 1)   # fused biases

    # Residual center crop: output (y,x) reads the residual at (y+sy, x+sx).
    sy = (H - H2) // 2
    sx = (W - W2) // 2
    res_shift = sy * W + sx

    kernel = functools.partial(convpass_kernel, W=W, KW1=KW1, KW2=KW2,
                               res_shift=res_shift)

    flops = 2 * N * HWp * Cout * (KH1 * KW1 * Cin_p + KH2 * KW2 * Cout + Cin_p)
    bytes_accessed = (4 * xf.size + 2 * (w1t.size + w2t.size + wrm.size)
                      + 4 * (b1c.size + b2rc.size) + 4 * N * Cout * HWp)

    out_full = pl.pallas_call(
        kernel,
        out_shape=jax.ShapeDtypeStruct((N, Cout, HWp), f32),
        grid_spec=pltpu.PrefetchScalarGridSpec(
            num_scalar_prefetch=0,
            grid=(N,),                       # one image per step; 2 TCs on v7x
            in_specs=[
                pl.BlockSpec((1, Cin_p, HWp), lambda n: (n, 0, 0)),
                pl.BlockSpec(w1t.shape, lambda n: (0, 0, 0)),   # resident
                pl.BlockSpec(b1c.shape, lambda n: (0, 0)),      # resident
                pl.BlockSpec(w2t.shape, lambda n: (0, 0, 0)),   # resident
                pl.BlockSpec(b2rc.shape, lambda n: (0, 0)),     # resident
                pl.BlockSpec(wrm.shape, lambda n: (0, 0)),      # resident
            ],
            out_specs=pl.BlockSpec((1, Cout, HWp), lambda n: (n, 0, 0)),
        ),
        compiler_params=pltpu.CompilerParams(
            dimension_semantics=("parallel",)),
        cost_estimate=pl.CostEstimate(
            flops=flops, transcendentals=0, bytes_accessed=bytes_accessed),
    )(xf, w1t, b1c, w2t, b2rc, wrm)

    # Valid conv outputs occupy the top-left (H2, W2) corner of the full grid.
    return out_full[:, :, :HW].reshape(N, Cout, H, W)[:, :, :H2, :W2]


def ref_forward(x, w1, b1, w2, b2, wr, br):
    """Pure-JAX reference mirroring the kernel's bf16-operand / f32-accum math
    (the standard TPU execution of an f32 conv)."""
    f32, bf16 = jnp.float32, jnp.bfloat16
    dn = ("NCHW", "OIHW", "NCHW")
    Cout, Cin = wr.shape

    def conv(inp, w, b):
        y = lax.conv_general_dilated(inp.astype(bf16), w.astype(bf16), (1, 1),
                                     "VALID", dimension_numbers=dn,
                                     preferred_element_type=f32)
        return y + b.astype(f32).reshape(1, -1, 1, 1)

    h = jax.nn.relu(conv(x, w1, b1))
    out = conv(h, w2, b2)
    res = conv(x, wr.reshape(Cout, Cin, 1, 1), br)
    H2, W2 = out.shape[-2], out.shape[-1]
    sy = (res.shape[-2] - H2) // 2
    sx = (res.shape[-1] - W2) // 2
    res = res[..., sy:sy + H2, sx:sx + W2]
    return jax.nn.relu(out + res)


if __name__ == "__main__":
    key = jax.random.PRNGKey(0)
    N, Cin, H, W = 2, 4, 16, 16
    Cout = 8
    k1, k2, k3, k4, k5, k6, k7 = jax.random.split(key, 7)

    # Deterministic synthetic parameters (PyTorch OIHW layout).
    x = jax.random.normal(k1, (N, Cin, H, W), jnp.float32)
    w1 = jax.random.normal(k2, (Cout, Cin, 3, 3), jnp.float32) * 0.1
    b1 = jax.random.normal(k3, (Cout,), jnp.float32) * 0.1
    w2 = jax.random.normal(k4, (Cout, Cout, 3, 3), jnp.float32) * 0.1
    b2 = jax.random.normal(k5, (Cout,), jnp.float32) * 0.1
    wr = jax.random.normal(k6, (Cout, Cin), jnp.float32) * 0.1
    br = jax.random.normal(k7, (Cout,), jnp.float32) * 0.1

    out = conv_pass_forward(x, w1, b1, w2, b2, wr, br)
    out = jax.block_until_ready(out)

    ref = ref_forward(x, w1, b1, w2, b2, wr, br)
    assert out.shape == (N, Cout, H - 4, W - 4), out.shape
    # Kernel and reference feed identical bf16 operands to the MXU with f32
    # accumulation; only accumulation order (and rare f32->bf16 double
    # rounding of the hidden layer) differs, so 5e-3 has ample margin.
    assert jnp.allclose(out, ref, rtol=5e-3, atol=5e-3), \
        float(jnp.max(jnp.abs(out - ref)))

    print("KERNEL_OK")
</pallas_src>

<mosaic_0001>
module attributes {stable_mosaic.version = 11 : i64} {
  func.func @convpass_kernel(%arg0: i32, %arg1: memref<1x8x256xf32, #tpu.memory_space<vmem>>, %arg2: memref<9x8x8xbf16, #tpu.memory_space<vmem>>, %arg3: memref<8x1xf32, #tpu.memory_space<vmem>>, %arg4: memref<9x8x8xbf16, #tpu.memory_space<vmem>>, %arg5: memref<8x1xf32, #tpu.memory_space<vmem>>, %arg6: memref<8x8xbf16, #tpu.memory_space<vmem>>, %arg7: memref<1x8x256xf32, #tpu.memory_space<vmem>>) attributes {dimension_semantics = [#tpu.dimension_semantics<parallel>], iteration_bounds = array<i64: 2>, scalar_prefetch = 0 : i64, scratch_operands = 0 : i64, tpu.core_type = #tpu.core_type<tc>, window_params = [{transform_indices = @transform_0, window_bounds = array<i64: 1, 8, 256>}, {pipeline_mode = #tpu.pipeline_mode<synchronous>, transform_indices = @transform_1, window_bounds = array<i64: 9, 8, 8>}, {pipeline_mode = #tpu.pipeline_mode<synchronous>, transform_indices = @transform_2, window_bounds = array<i64: 8, 1>}, {pipeline_mode = #tpu.pipeline_mode<synchronous>, transform_indices = @transform_3, window_bounds = array<i64: 9, 8, 8>}, {pipeline_mode = #tpu.pipeline_mode<synchronous>, transform_indices = @transform_4, window_bounds = array<i64: 8, 1>}, {pipeline_mode = #tpu.pipeline_mode<synchronous>, transform_indices = @transform_5, window_bounds = array<i64: 8, 8>}, {transform_indices = @transform_6, window_bounds = array<i64: 1, 8, 256>}]} {
    %c0 = arith.constant 0 : index
    %c0_0 = arith.constant 0 : index
    %c0_1 = arith.constant 0 : index
    %0 = vector.load %arg1[%c0, %c0_0, %c0_1] : memref<1x8x256xf32, #tpu.memory_space<vmem>>, vector<1x8x256xf32>
    %1 = vector.shape_cast %0 : vector<1x8x256xf32> to vector<8x256xf32>
    %c0_2 = arith.constant 0 : index
    %c0_3 = arith.constant 0 : index
    %2 = vector.load %arg3[%c0_2, %c0_3] : memref<8x1xf32, #tpu.memory_space<vmem>>, vector<8x1xf32>
    %3 = vector.shape_cast %2 : vector<8x1xf32> to vector<8x1xf32>
    %4 = vector.broadcast %3 : vector<8x1xf32> to vector<8x256xf32>
    %c0_4 = arith.constant 0 : index
    %c0_5 = arith.constant 0 : index
    %c0_6 = arith.constant 0 : index
    %5 = vector.load %arg2[%c0_4, %c0_5, %c0_6] : memref<9x8x8xbf16, #tpu.memory_space<vmem>>, vector<1x8x8xbf16>
    %6 = vector.shape_cast %5 : vector<1x8x8xbf16> to vector<8x8xbf16>
    %7 = arith.truncf %1 : vector<8x256xf32> to vector<8x256xbf16>
    %cst = arith.constant dense<0.000000e+00> : vector<8x256xf32>
    %8 = tpu.matmul %6, %7, %cst {dimension_numbers = #tpu.dot_dimension_numbers<[1], [0], [0], [1], [0, 0, 1, 1], [], []>} : vector<8x8xbf16>, vector<8x256xbf16>, vector<8x256xf32> -> vector<8x256xf32>
    %9 = arith.addf %4, %8 : vector<8x256xf32>
    %c1 = arith.constant 1 : index
    %c0_7 = arith.constant 0 : index
    %c0_8 = arith.constant 0 : index
    %10 = vector.load %arg2[%c1, %c0_7, %c0_8] : memref<9x8x8xbf16, #tpu.memory_space<vmem>>, vector<1x8x8xbf16>
    %11 = vector.shape_cast %10 : vector<1x8x8xbf16> to vector<8x8xbf16>
    %c255_i32 = arith.constant 255 : i32
    %12 = tpu.dynamic_rotate %1 by %c255_i32 dim 1 : vector<8x256xf32>, i32 -> vector<8x256xf32>
    %13 = arith.truncf %12 : vector<8x256xf32> to vector<8x256xbf16>
    %cst_9 = arith.constant dense<0.000000e+00> : vector<8x256xf32>
    %14 = tpu.matmul %11, %13, %cst_9 {dimension_numbers = #tpu.dot_dimension_numbers<[1], [0], [0], [1], [0, 0, 1, 1], [], []>} : vector<8x8xbf16>, vector<8x256xbf16>, vector<8x256xf32> -> vector<8x256xf32>
    %15 = arith.addf %9, %14 : vector<8x256xf32>
    %c2 = arith.constant 2 : index
    %c0_10 = arith.constant 0 : index
    %c0_11 = arith.constant 0 : index
    %16 = vector.load %arg2[%c2, %c0_10, %c0_11] : memref<9x8x8xbf16, #tpu.memory_space<vmem>>, vector<1x8x8xbf16>
    %17 = vector.shape_cast %16 : vector<1x8x8xbf16> to vector<8x8xbf16>
    %c254_i32 = arith.constant 254 : i32
    %18 = tpu.dynamic_rotate %1 by %c254_i32 dim 1 : vector<8x256xf32>, i32 -> vector<8x256xf32>
    %19 = arith.truncf %18 : vector<8x256xf32> to vector<8x256xbf16>
    %cst_12 = arith.constant dense<0.000000e+00> : vector<8x256xf32>
    %20 = tpu.matmul %17, %19, %cst_12 {dimension_numbers = #tpu.dot_dimension_numbers<[1], [0], [0], [1], [0, 0, 1, 1], [], []>} : vector<8x8xbf16>, vector<8x256xbf16>, vector<8x256xf32> -> vector<8x256xf32>
    %21 = arith.addf %15, %20 : vector<8x256xf32>
    %c3 = arith.constant 3 : index
    %c0_13 = arith.constant 0 : index
    %c0_14 = arith.constant 0 : index
    %22 = vector.load %arg2[%c3, %c0_13, %c0_14] : memref<9x8x8xbf16, #tpu.memory_space<vmem>>, vector<1x8x8xbf16>
    %23 = vector.shape_cast %22 : vector<1x8x8xbf16> to vector<8x8xbf16>
    %c240_i32 = arith.constant 240 : i32
    %24 = tpu.dynamic_rotate %1 by %c240_i32 dim 1 : vector<8x256xf32>, i32 -> vector<8x256xf32>
    %25 = arith.truncf %24 : vector<8x256xf32> to vector<8x256xbf16>
    %cst_15 = arith.constant dense<0.000000e+00> : vector<8x256xf32>
    %26 = tpu.matmul %23, %25, %cst_15 {dimension_numbers = #tpu.dot_dimension_numbers<[1], [0], [0], [1], [0, 0, 1, 1], [], []>} : vector<8x8xbf16>, vector<8x256xbf16>, vector<8x256xf32> -> vector<8x256xf32>
    %27 = arith.addf %21, %26 : vector<8x256xf32>
    %c4 = arith.constant 4 : index
    %c0_16 = arith.constant 0 : index
    %c0_17 = arith.constant 0 : index
    %28 = vector.load %arg2[%c4, %c0_16, %c0_17] : memref<9x8x8xbf16, #tpu.memory_space<vmem>>, vector<1x8x8xbf16>
    %29 = vector.shape_cast %28 : vector<1x8x8xbf16> to vector<8x8xbf16>
    %c239_i32 = arith.constant 239 : i32
    %30 = tpu.dynamic_rotate %1 by %c239_i32 dim 1 : vector<8x256xf32>, i32 -> vector<8x256xf32>
    %31 = arith.truncf %30 : vector<8x256xf32> to vector<8x256xbf16>
    %cst_18 = arith.constant dense<0.000000e+00> : vector<8x256xf32>
    %32 = tpu.matmul %29, %31, %cst_18 {dimension_numbers = #tpu.dot_dimension_numbers<[1], [0], [0], [1], [0, 0, 1, 1], [], []>} : vector<8x8xbf16>, vector<8x256xbf16>, vector<8x256xf32> -> vector<8x256xf32>
    %33 = arith.addf %27, %32 : vector<8x256xf32>
    %c5 = arith.constant 5 : index
    %c0_19 = arith.constant 0 : index
    %c0_20 = arith.constant 0 : index
    %34 = vector.load %arg2[%c5, %c0_19, %c0_20] : memref<9x8x8xbf16, #tpu.memory_space<vmem>>, vector<1x8x8xbf16>
    %35 = vector.shape_cast %34 : vector<1x8x8xbf16> to vector<8x8xbf16>
    %c238_i32 = arith.constant 238 : i32
    %36 = tpu.dynamic_rotate %1 by %c238_i32 dim 1 : vector<8x256xf32>, i32 -> vector<8x256xf32>
    %37 = arith.truncf %36 : vector<8x256xf32> to vector<8x256xbf16>
    %cst_21 = arith.constant dense<0.000000e+00> : vector<8x256xf32>
    %38 = tpu.matmul %35, %37, %cst_21 {dimension_numbers = #tpu.dot_dimension_numbers<[1], [0], [0], [1], [0, 0, 1, 1], [], []>} : vector<8x8xbf16>, vector<8x256xbf16>, vector<8x256xf32> -> vector<8x256xf32>
    %39 = arith.addf %33, %38 : vector<8x256xf32>
    %c6 = arith.constant 6 : index
    %c0_22 = arith.constant 0 : index
    %c0_23 = arith.constant 0 : index
    %40 = vector.load %arg2[%c6, %c0_22, %c0_23] : memref<9x8x8xbf16, #tpu.memory_space<vmem>>, vector<1x8x8xbf16>
    %41 = vector.shape_cast %40 : vector<1x8x8xbf16> to vector<8x8xbf16>
    %c224_i32 = arith.constant 224 : i32
    %42 = tpu.dynamic_rotate %1 by %c224_i32 dim 1 : vector<8x256xf32>, i32 -> vector<8x256xf32>
    %43 = arith.truncf %42 : vector<8x256xf32> to vector<8x256xbf16>
    %cst_24 = arith.constant dense<0.000000e+00> : vector<8x256xf32>
    %44 = tpu.matmul %41, %43, %cst_24 {dimension_numbers = #tpu.dot_dimension_numbers<[1], [0], [0], [1], [0, 0, 1, 1], [], []>} : vector<8x8xbf16>, vector<8x256xbf16>, vector<8x256xf32> -> vector<8x256xf32>
    %45 = arith.addf %39, %44 : vector<8x256xf32>
    %c7 = arith.constant 7 : index
    %c0_25 = arith.constant 0 : index
    %c0_26 = arith.constant 0 : index
    %46 = vector.load %arg2[%c7, %c0_25, %c0_26] : memref<9x8x8xbf16, #tpu.memory_space<vmem>>, vector<1x8x8xbf16>
    %47 = vector.shape_cast %46 : vector<1x8x8xbf16> to vector<8x8xbf16>
    %c223_i32 = arith.constant 223 : i32
    %48 = tpu.dynamic_rotate %1 by %c223_i32 dim 1 : vector<8x256xf32>, i32 -> vector<8x256xf32>
    %49 = arith.truncf %48 : vector<8x256xf32> to vector<8x256xbf16>
    %cst_27 = arith.constant dense<0.000000e+00> : vector<8x256xf32>
    %50 = tpu.matmul %47, %49, %cst_27 {dimension_numbers = #tpu.dot_dimension_numbers<[1], [0], [0], [1], [0, 0, 1, 1], [], []>} : vector<8x8xbf16>, vector<8x256xbf16>, vector<8x256xf32> -> vector<8x256xf32>
    %51 = arith.addf %45, %50 : vector<8x256xf32>
    %c8 = arith.constant 8 : index
    %c0_28 = arith.constant 0 : index
    %c0_29 = arith.constant 0 : index
    %52 = vector.load %arg2[%c8, %c0_28, %c0_29] : memref<9x8x8xbf16, #tpu.memory_space<vmem>>, vector<1x8x8xbf16>
    %53 = vector.shape_cast %52 : vector<1x8x8xbf16> to vector<8x8xbf16>
    %c222_i32 = arith.constant 222 : i32
    %54 = tpu.dynamic_rotate %1 by %c222_i32 dim 1 : vector<8x256xf32>, i32 -> vector<8x256xf32>
    %55 = arith.truncf %54 : vector<8x256xf32> to vector<8x256xbf16>
    %cst_30 = arith.constant dense<0.000000e+00> : vector<8x256xf32>
    %56 = tpu.matmul %53, %55, %cst_30 {dimension_numbers = #tpu.dot_dimension_numbers<[1], [0], [0], [1], [0, 0, 1, 1], [], []>} : vector<8x8xbf16>, vector<8x256xbf16>, vector<8x256xf32> -> vector<8x256xf32>
    %57 = arith.addf %51, %56 : vector<8x256xf32>
    %cst_31 = arith.constant 0.000000e+00 : f32
    %58 = vector.broadcast %cst_31 : f32 to vector<8x256xf32>
    %59 = arith.maximumf %57, %58 : vector<8x256xf32>
    %c0_32 = arith.constant 0 : index
    %c0_33 = arith.constant 0 : index
    %60 = vector.load %arg6[%c0_32, %c0_33] : memref<8x8xbf16, #tpu.memory_space<vmem>>, vector<8x8xbf16>
    %c222_i32_34 = arith.constant 222 : i32
    %61 = tpu.dynamic_rotate %1 by %c222_i32_34 dim 1 : vector<8x256xf32>, i32 -> vector<8x256xf32>
    %62 = arith.truncf %61 : vector<8x256xf32> to vector<8x256xbf16>
    %cst_35 = arith.constant dense<0.000000e+00> : vector<8x256xf32>
    %63 = tpu.matmul %60, %62, %cst_35 {dimension_numbers = #tpu.dot_dimension_numbers<[1], [0], [0], [1], [0, 0, 1, 1], [], []>} : vector<8x8xbf16>, vector<8x256xbf16>, vector<8x256xf32> -> vector<8x256xf32>
    %c0_36 = arith.constant 0 : index
    %c0_37 = arith.constant 0 : index
    %64 = vector.load %arg5[%c0_36, %c0_37] : memref<8x1xf32, #tpu.memory_space<vmem>>, vector<8x1xf32>
    %65 = vector.broadcast %64 : vector<8x1xf32> to vector<8x256xf32>
    %66 = arith.addf %63, %65 : vector<8x256xf32>
    %c0_38 = arith.constant 0 : index
    %c0_39 = arith.constant 0 : index
    %c0_40 = arith.constant 0 : index
    %67 = vector.load %arg4[%c0_38, %c0_39, %c0_40] : memref<9x8x8xbf16, #tpu.memory_space<vmem>>, vector<1x8x8xbf16>
    %68 = vector.shape_cast %67 : vector<1x8x8xbf16> to vector<8x8xbf16>
    %69 = arith.truncf %59 : vector<8x256xf32> to vector<8x256xbf16>
    %cst_41 = arith.constant dense<0.000000e+00> : vector<8x256xf32>
    %70 = tpu.matmul %68, %69, %cst_41 {dimension_numbers = #tpu.dot_dimension_numbers<[1], [0], [0], [1], [0, 0, 1, 1], [], []>} : vector<8x8xbf16>, vector<8x256xbf16>, vector<8x256xf32> -> vector<8x256xf32>
    %71 = arith.addf %66, %70 : vector<8x256xf32>
    %c1_42 = arith.constant 1 : index
    %c0_43 = arith.constant 0 : index
    %c0_44 = arith.constant 0 : index
    %72 = vector.load %arg4[%c1_42, %c0_43, %c0_44] : memref<9x8x8xbf16, #tpu.memory_space<vmem>>, vector<1x8x8xbf16>
    %73 = vector.shape_cast %72 : vector<1x8x8xbf16> to vector<8x8xbf16>
    %c255_i32_45 = arith.constant 255 : i32
    %74 = tpu.dynamic_rotate %59 by %c255_i32_45 dim 1 : vector<8x256xf32>, i32 -> vector<8x256xf32>
    %75 = arith.truncf %74 : vector<8x256xf32> to vector<8x256xbf16>
    %cst_46 = arith.constant dense<0.000000e+00> : vector<8x256xf32>
    %76 = tpu.matmul %73, %75, %cst_46 {dimension_numbers = #tpu.dot_dimension_numbers<[1], [0], [0], [1], [0, 0, 1, 1], [], []>} : vector<8x8xbf16>, vector<8x256xbf16>, vector<8x256xf32> -> vector<8x256xf32>
    %77 = arith.addf %71, %76 : vector<8x256xf32>
    %c2_47 = arith.constant 2 : index
    %c0_48 = arith.constant 0 : index
    %c0_49 = arith.constant 0 : index
    %78 = vector.load %arg4[%c2_47, %c0_48, %c0_49] : memref<9x8x8xbf16, #tpu.memory_space<vmem>>, vector<1x8x8xbf16>
    %79 = vector.shape_cast %78 : vector<1x8x8xbf16> to vector<8x8xbf16>
    %c254_i32_50 = arith.constant 254 : i32
    %80 = tpu.dynamic_rotate %59 by %c254_i32_50 dim 1 : vector<8x256xf32>, i32 -> vector<8x256xf32>
    %81 = arith.truncf %80 : vector<8x256xf32> to vector<8x256xbf16>
    %cst_51 = arith.constant dense<0.000000e+00> : vector<8x256xf32>
    %82 = tpu.matmul %79, %81, %cst_51 {dimension_numbers = #tpu.dot_dimension_numbers<[1], [0], [0], [1], [0, 0, 1, 1], [], []>} : vector<8x8xbf16>, vector<8x256xbf16>, vector<8x256xf32> -> vector<8x256xf32>
    %83 = arith.addf %77, %82 : vector<8x256xf32>
    %c3_52 = arith.constant 3 : index
    %c0_53 = arith.constant 0 : index
    %c0_54 = arith.constant 0 : index
    %84 = vector.load %arg4[%c3_52, %c0_53, %c0_54] : memref<9x8x8xbf16, #tpu.memory_space<vmem>>, vector<1x8x8xbf16>
    %85 = vector.shape_cast %84 : vector<1x8x8xbf16> to vector<8x8xbf16>
    %c240_i32_55 = arith.constant 240 : i32
    %86 = tpu.dynamic_rotate %59 by %c240_i32_55 dim 1 : vector<8x256xf32>, i32 -> vector<8x256xf32>
    %87 = arith.truncf %86 : vector<8x256xf32> to vector<8x256xbf16>
    %cst_56 = arith.constant dense<0.000000e+00> : vector<8x256xf32>
    %88 = tpu.matmul %85, %87, %cst_56 {dimension_numbers = #tpu.dot_dimension_numbers<[1], [0], [0], [1], [0, 0, 1, 1], [], []>} : vector<8x8xbf16>, vector<8x256xbf16>, vector<8x256xf32> -> vector<8x256xf32>
    %89 = arith.addf %83, %88 : vector<8x256xf32>
    %c4_57 = arith.constant 4 : index
    %c0_58 = arith.constant 0 : index
    %c0_59 = arith.constant 0 : index
    %90 = vector.load %arg4[%c4_57, %c0_58, %c0_59] : memref<9x8x8xbf16, #tpu.memory_space<vmem>>, vector<1x8x8xbf16>
    %91 = vector.shape_cast %90 : vector<1x8x8xbf16> to vector<8x8xbf16>
    %c239_i32_60 = arith.constant 239 : i32
    %92 = tpu.dynamic_rotate %59 by %c239_i32_60 dim 1 : vector<8x256xf32>, i32 -> vector<8x256xf32>
    %93 = arith.truncf %92 : vector<8x256xf32> to vector<8x256xbf16>
    %cst_61 = arith.constant dense<0.000000e+00> : vector<8x256xf32>
    %94 = tpu.matmul %91, %93, %cst_61 {dimension_numbers = #tpu.dot_dimension_numbers<[1], [0], [0], [1], [0, 0, 1, 1], [], []>} : vector<8x8xbf16>, vector<8x256xbf16>, vector<8x256xf32> -> vector<8x256xf32>
    %95 = arith.addf %89, %94 : vector<8x256xf32>
    %c5_62 = arith.constant 5 : index
    %c0_63 = arith.constant 0 : index
    %c0_64 = arith.constant 0 : index
    %96 = vector.load %arg4[%c5_62, %c0_63, %c0_64] : memref<9x8x8xbf16, #tpu.memory_space<vmem>>, vector<1x8x8xbf16>
    %97 = vector.shape_cast %96 : vector<1x8x8xbf16> to vector<8x8xbf16>
    %c238_i32_65 = arith.constant 238 : i32
    %98 = tpu.dynamic_rotate %59 by %c238_i32_65 dim 1 : vector<8x256xf32>, i32 -> vector<8x256xf32>
    %99 = arith.truncf %98 : vector<8x256xf32> to vector<8x256xbf16>
    %cst_66 = arith.constant dense<0.000000e+00> : vector<8x256xf32>
    %100 = tpu.matmul %97, %99, %cst_66 {dimension_numbers = #tpu.dot_dimension_numbers<[1], [0], [0], [1], [0, 0, 1, 1], [], []>} : vector<8x8xbf16>, vector<8x256xbf16>, vector<8x256xf32> -> vector<8x256xf32>
    %101 = arith.addf %95, %100 : vector<8x256xf32>
    %c6_67 = arith.constant 6 : index
    %c0_68 = arith.constant 0 : index
    %c0_69 = arith.constant 0 : index
    %102 = vector.load %arg4[%c6_67, %c0_68, %c0_69] : memref<9x8x8xbf16, #tpu.memory_space<vmem>>, vector<1x8x8xbf16>
    %103 = vector.shape_cast %102 : vector<1x8x8xbf16> to vector<8x8xbf16>
    %c224_i32_70 = arith.constant 224 : i32
    %104 = tpu.dynamic_rotate %59 by %c224_i32_70 dim 1 : vector<8x256xf32>, i32 -> vector<8x256xf32>
    %105 = arith.truncf %104 : vector<8x256xf32> to vector<8x256xbf16>
    %cst_71 = arith.constant dense<0.000000e+00> : vector<8x256xf32>
    %106 = tpu.matmul %103, %105, %cst_71 {dimension_numbers = #tpu.dot_dimension_numbers<[1], [0], [0], [1], [0, 0, 1, 1], [], []>} : vector<8x8xbf16>, vector<8x256xbf16>, vector<8x256xf32> -> vector<8x256xf32>
    %107 = arith.addf %101, %106 : vector<8x256xf32>
    %c7_72 = arith.constant 7 : index
    %c0_73 = arith.constant 0 : index
    %c0_74 = arith.constant 0 : index
    %108 = vector.load %arg4[%c7_72, %c0_73, %c0_74] : memref<9x8x8xbf16, #tpu.memory_space<vmem>>, vector<1x8x8xbf16>
    %109 = vector.shape_cast %108 : vector<1x8x8xbf16> to vector<8x8xbf16>
    %c223_i32_75 = arith.constant 223 : i32
    %110 = tpu.dynamic_rotate %59 by %c223_i32_75 dim 1 : vector<8x256xf32>, i32 -> vector<8x256xf32>
    %111 = arith.truncf %110 : vector<8x256xf32> to vector<8x256xbf16>
    %cst_76 = arith.constant dense<0.000000e+00> : vector<8x256xf32>
    %112 = tpu.matmul %109, %111, %cst_76 {dimension_numbers = #tpu.dot_dimension_numbers<[1], [0], [0], [1], [0, 0, 1, 1], [], []>} : vector<8x8xbf16>, vector<8x256xbf16>, vector<8x256xf32> -> vector<8x256xf32>
    %113 = arith.addf %107, %112 : vector<8x256xf32>
    %c8_77 = arith.constant 8 : index
    %c0_78 = arith.constant 0 : index
    %c0_79 = arith.constant 0 : index
    %114 = vector.load %arg4[%c8_77, %c0_78, %c0_79] : memref<9x8x8xbf16, #tpu.memory_space<vmem>>, vector<1x8x8xbf16>
    %115 = vector.shape_cast %114 : vector<1x8x8xbf16> to vector<8x8xbf16>
    %c222_i32_80 = arith.constant 222 : i32
    %116 = tpu.dynamic_rotate %59 by %c222_i32_80 dim 1 : vector<8x256xf32>, i32 -> vector<8x256xf32>
    %117 = arith.truncf %116 : vector<8x256xf32> to vector<8x256xbf16>
    %cst_81 = arith.constant dense<0.000000e+00> : vector<8x256xf32>
    %118 = tpu.matmul %115, %117, %cst_81 {dimension_numbers = #tpu.dot_dimension_numbers<[1], [0], [0], [1], [0, 0, 1, 1], [], []>} : vector<8x8xbf16>, vector<8x256xbf16>, vector<8x256xf32> -> vector<8x256xf32>
    %119 = arith.addf %113, %118 : vector<8x256xf32>
    %cst_82 = arith.constant 0.000000e+00 : f32
    %120 = vector.broadcast %cst_82 : f32 to vector<8x256xf32>
    %121 = arith.maximumf %119, %120 : vector<8x256xf32>
    %c0_83 = arith.constant 0 : index
    %c0_84 = arith.constant 0 : index
    %c0_85 = arith.constant 0 : index
    %122 = vector.load %arg7[%c0_83, %c0_84, %c0_85] : memref<1x8x256xf32, #tpu.memory_space<vmem>>, vector<1x8x256xf32>
    %123 = vector.shape_cast %122 : vector<1x8x256xf32> to vector<8x256xf32>
    %124 = vector.shape_cast %121 : vector<8x256xf32> to vector<1x8x256xf32>
    tpu.vector_store %arg7[%c0_83, %c0_84, %c0_85], %124 {strides = array<i32>} : memref<1x8x256xf32, #tpu.memory_space<vmem>>, vector<1x8x256xf32>,
    return
  }
  func.func @transform_0(%arg0: i32) -> (i32, i32, i32) {
    %c0_i32 = arith.constant 0 : i32
    %c0_i32_0 = arith.constant 0 : i32
    %c0_i32_1 = arith.constant 0 : i32
    return %arg0, %c0_i32, %c0_i32_0 : i32, i32, i32
  }
  func.func @transform_1(%arg0: i32) -> (i32, i32, i32) {
    %c0_i32 = arith.constant 0 : i32
    %c0_i32_0 = arith.constant 0 : i32
    %c0_i32_1 = arith.constant 0 : i32
    %c0_i32_2 = arith.constant 0 : i32
    return %c0_i32, %c0_i32_0, %c0_i32_1 : i32, i32, i32
  }
  func.func @transform_2(%arg0: i32) -> (i32, i32) {
    %c0_i32 = arith.constant 0 : i32
    %c0_i32_0 = arith.constant 0 : i32
    %c0_i32_1 = arith.constant 0 : i32
    return %c0_i32, %c0_i32_0 : i32, i32
  }
  func.func @transform_3(%arg0: i32) -> (i32, i32, i32) {
    %c0_i32 = arith.constant 0 : i32
    %c0_i32_0 = arith.constant 0 : i32
    %c0_i32_1 = arith.constant 0 : i32
    %c0_i32_2 = arith.constant 0 : i32
    return %c0_i32, %c0_i32_0, %c0_i32_1 : i32, i32, i32
  }
  func.func @transform_4(%arg0: i32) -> (i32, i32) {
    %c0_i32 = arith.constant 0 : i32
    %c0_i32_0 = arith.constant 0 : i32
    %c0_i32_1 = arith.constant 0 : i32
    return %c0_i32, %c0_i32_0 : i32, i32
  }
  func.func @transform_5(%arg0: i32) -> (i32, i32) {
    %c0_i32 = arith.constant 0 : i32
    %c0_i32_0 = arith.constant 0 : i32
    %c0_i32_1 = arith.constant 0 : i32
    return %c0_i32, %c0_i32_0 : i32, i32
  }
  func.func @transform_6(%arg0: i32) -> (i32, i32, i32) {
    %c0_i32 = arith.constant 0 : i32
    %c0_i32_0 = arith.constant 0 : i32
    %c0_i32_1 = arith.constant 0 : i32
    return %arg0, %c0_i32, %c0_i32_0 : i32, i32, i32
  }
}

</mosaic_0001>

<bundles_post_ra>
// kernel: conv_pass_forward.1
= control target key start
LH: loop header
LB: loop body
LE: loop exit
PB: predicated region body
PF: predicated region fallthrough
CT: control target
= control target key end

     0   :  { %s1776_s21 = smov 0   ;;  %s2029_s0 = inlined_call_operand.vmem [shape: f32[2,8,256], index: 0, kind: input, shape index: {}]   ;;  %s2030_s1 = inlined_call_operand.vmem [shape: bf16[9,8,8], index: 1, kind: input, shape index: {}]   ;;  %s2031_s2 = inlined_call_operand.vmem [shape: f32[8,1], index: 2, kind: input, shape index: {}]   ;;  %s2032_s3 = inlined_call_operand.vmem [shape: bf16[9,8,8], index: 3, kind: input, shape index: {}]   ;;  %s2033_s4 = inlined_call_operand.vmem [shape: f32[8,1], index: 4, kind: input, shape index: {}]   ;;  %s2034_s5 = inlined_call_operand.vmem [shape: bf16[8,8], index: 5, kind: input, shape index: {}]   ;;  %s2035_s6 = inlined_call_operand.vmem [shape: f32[2,8,256], index: 6, kind: output, shape index: {}]  }
   0x1 LB: > { %s1487_s22 = sadd.s32 4294967295, %s1730_s21   ;;  %p1491_p0 = scmp.ge.s32.totalorder %s1730_s21, 1  ;;  %s1730_s21 = sphi %s1776_s21, %s16_s21  }
   0x2   : > { %p212_p1 = scmp.lt.s32.totalorder %s1730_s21, 3 }
   0x4   : > { %p213_p2 = pnand %p1491_p0, %p212_p1 }
   0x5   : > { %p242_p3 = scmp.lt.s32.totalorder (!%p213_p2), %s1487_s22, 1  ;;  %v1732_v0 = vmov (!%p213_p2), 0   ;;  %vm268_vm0 = vcmask (!%p213_p2), 1043456   ;;  %s1733_s27 = smov (!%p213_p2), 127   ;;  %v261_v7 = vld [vmem:[%s2030_s1] sm:$0xf] (!%p213_p2)  ;;  %v324_v9 = vlaneseq (!%p213_p2) }
   0x6   : > { %216 = sbr.rel (%p213_p2) target bundleno = 872 (0x368), region = 44  ;;  %307 = vmatprep.mubr.bf16.mxu0 (!%p213_p2), %v1732_v0  ;;  %1683 = vset.pattern.permute.xlu0 (!%p213_p2), %v1732_v0  ;;  %s1734_s28 = smov (!%p213_p2), 112   ;;  %vm264_vm1 = vcmask (!%p213_p2), 64512   ;;  %v255_v8 = vld [vmem:[%s2031_s2] sm:$0xff] (!%p213_p2)  ;;  %v1501_v47 = vld [vmem:[%s2030_s1 + $0x8] sm:$0xf] (!%p213_p2) }
   0x7   : > { %868 = vmatprep.mubr.bf16.mxu1 (!%p213_p2), %v1732_v0  ;;  %s1735_s7 = smov (!%p213_p2), 126   ;;  %s1736_s8 = smov (!%p213_p2), 111   ;;  %v1813_v10 = vand.u32 (!%p213_p2), 127, %v324_v9  ;;  %v1498_v27 = vld [vmem:[%s2030_s1 + $0x4] sm:$0xf] (!%p213_p2) }
   0x8   : > { %s1737_s9 = smov (!%p213_p2), 110   ;;  %s1738_s10 = smov (!%p213_p2), 96   ;;  %v1504_v57 = vld [vmem:[%s2030_s1 + $0xc] sm:$0xf] (!%p213_p2) }
   0x9   : > { %s1739_s11 = smov (!%p213_p2), 95   ;;  %s1740_s12 = smov (!%p213_p2), 94   ;;  %vm326_vm2 = vcmp.lt.s32.totalorder (!%p213_p2), %v1813_v10, 127  ;;  %vm452_vm3 = vcmp.lt.s32.totalorder (!%p213_p2), %v1813_v10, 112  ;;  %vm389_vm4 = vcmp.lt.s32.totalorder (!%p213_p2), %v1813_v10, 126  ;;  %vm767_vm5 = vcmp.lt.s32.totalorder (!%p213_p2), %v1813_v10, 94 }
   0xa   : > { %vm515_vm6 = vcmp.lt.s32.totalorder (!%p213_p2), %v1813_v10, 111  ;;  %vm578_vm7 = vcmp.lt.s32.totalorder (!%p213_p2), %v1813_v10, 110  ;;  %vm641_vm8 = vcmp.lt.s32.totalorder (!%p213_p2), %v1813_v10, 96  ;;  %vm704_vm9 = vcmp.lt.s32.totalorder (!%p213_p2), %v1813_v10, 95 }
   0xd   : > { %s2037_s22 = smov (!%p242_p3, %s1487_s22), 1 }
   0xe   : > { %s1552_s23 = sshll.u32 %s2037_s22, 4 }
   0xf   : > { %s246_s26 = scalar_lea.vmem %s2029_s0, %s1552_s23  ;;  %s251_s24 = scalar_lea.vmem %s2035_s6, %s1552_s23 }
  0x10   : > { %v253_v1 = vld [vmem:[%s246_s26] sm:$0xff]  ;;  %v254_v2 = vld [vmem:[%s246_s26 + $0x8] sm:$0xff] }
  0x11   : > { %v1643_v3 = vpack.i.bf16 %v254_v2, %v253_v1  ;;  %v263_v4 = vpack.c.bf16 %v254_v2, %v254_v2  ;;  %v262_v5 = vpack.c.bf16 %v253_v1, %v253_v1  ;;  %v1507_v2 = vld [vmem:[%s2030_s1 + $0x10] sm:$0xf] }
  0x13   : > { %1644 = vrot.lane.b32.xlu0 %v1643_v3, %s1733_s27  ;;  %1654 = vrot.lane.b32.xlu1 %v1643_v3, %s1734_s28  ;;  %v270_v6 = vsel %vm268_vm0, %v262_v5, 0 }
  0x14   : > { %1496 = vmatprep.subr.msk.bf16.mxu0 %vm268_vm0, %v263_v4 }
  0x15   : > { %276 = vmatpush1.bf16.msra.mxu0 %v270_v6 }
  0x17   : > { %1649 = vrot.lane.b32.xlu0 %v1643_v3, %s1735_s7  ;;  %1659 = vrot.lane.b32.xlu1 %v1643_v3, %s1736_s8 }
  0x18   : > { %1497 = vmatmul.mubr.msk.bf16.vlgmr.msra.gmra.mrb[0].mxu0 %vm264_vm1, %v261_v7 }
  0x19   : > { %372 = vmatprep.mubr.bf16.mxu0 %v1732_v0 }
  0x1b   : > { %1664 = vrot.lane.b32.xlu0 %v1643_v3, %s1737_s9  ;;  %1669 = vrot.lane.b32.xlu1 %v1643_v3, %s1738_s10 }
  0x1f   : > { %1674 = vrot.lane.b32.xlu0 %v1643_v3, %s1739_s11  ;;  %1679 = vrot.lane.b32.xlu1 %v1643_v3, %s1740_s12 }
  0x23   : > { %258 = vperm.xlu0 %1683, %v255_v8  }
  0x85   : > { %v1645_v11 = vpop.permute.xlu0 %1644  ;;  %v1655_v12 = vpop.permute.xlu1 %1654 }
  0x86   : > { %v1647_v13 = vunpack.i.h.bf16 %v1645_v11  ;;  %v1646_v14 = vunpack.i.l.bf16 %v1645_v11  ;;  %v1657_v15 = vunpack.i.h.bf16 %v1655_v12  ;;  %v1656_v16 = vunpack.i.l.bf16 %v1655_v12  ;;  %v1510_v12 = vld [vmem:[%s2030_s1 + $0x14] sm:$0xf] }
  0x88   : > { %v328_v17 = vsel %vm326_vm2, %v1647_v13, %v1646_v14  ;;  %v327_v18 = vsel %vm326_vm2, %v1646_v14, %v1647_v13  ;;  %v454_v25 = vsel %vm452_vm3, %v1657_v15, %v1656_v16  ;;  %v453_v36 = vsel %vm452_vm3, %v1656_v16, %v1657_v15 }
  0x89   : > { %v330_v19 = vpack.c.bf16 %v328_v17, %v328_v17  ;;  %v329_v20 = vpack.c.bf16 %v327_v18, %v327_v18  ;;  %v1650_v21 = vpop.permute.xlu0 %1649  ;;  %v1660_v22 = vpop.permute.xlu1 %1659  ;;  %v456_v32 = vpack.c.bf16 %v454_v25, %v454_v25  ;;  %v455_v41 = vpack.c.bf16 %v453_v36, %v453_v36  ;;  %v1513_v17 = vld [vmem:[%s2030_s1 + $0x18] sm:$0xf]  ;;  %v827_v36 = vld [vmem:[%s2033_s4] sm:$0xff] }
  0x8a   : > { %v1652_v23 = vunpack.i.h.bf16 %v1650_v21  ;;  %v1651_v24 = vunpack.i.l.bf16 %v1650_v21  ;;  %v1662_v37 = vunpack.i.h.bf16 %v1660_v22  ;;  %v1661_v38 = vunpack.i.l.bf16 %v1660_v22  ;;  %v826_v21 = vld [vmem:[%s2034_s5] sm:$0xf] }
  0x8b   : > { %1499 = vmatprep.subr.msk.bf16.mxu0 %vm268_vm0, %v330_v19  ;;  %v335_v26 = vsel %vm268_vm0, %v329_v20, 0  ;;  %v461_v49 = vsel %vm268_vm0, %v455_v41, 0  ;;  %v1516_v19 = vld [vmem:[%s2030_s1 + $0x1c] sm:$0xf]  ;;  %v1519_v20 = vld [vmem:[%s2030_s1 + $0x20] sm:$0xf] }
  0x8c   : > { %341 = vmatpush1.bf16.msra.mxu0 %v335_v26  ;;  %v391_v28 = vsel %vm389_vm4, %v1652_v23, %v1651_v24  ;;  %v390_v29 = vsel %vm389_vm4, %v1651_v24, %v1652_v23  ;;  %v517_v44 = vsel %vm515_vm6, %v1662_v37, %v1661_v38  ;;  %v516_v52 = vsel %vm515_vm6, %v1661_v38, %v1662_v37 }
  0x8d   : > { %v393_v30 = vpack.c.bf16 %v391_v28, %v391_v28  ;;  %v392_v31 = vpack.c.bf16 %v390_v29, %v390_v29  ;;  %v1670_v33 = vpop.permute.xlu1 %1669  ;;  %v519_v50 = vpack.c.bf16 %v517_v44, %v517_v44  ;;  %v1665_v51 = vpop.permute.xlu0 %1664  ;;  %v518_v55 = vpack.c.bf16 %v516_v52, %v516_v52 }
  0x8e   : > { %v1667_v53 = vunpack.i.h.bf16 %v1665_v51  ;;  %v1666_v54 = vunpack.i.l.bf16 %v1665_v51  ;;  %v1672_v61 = vunpack.i.h.bf16 %v1670_v33  ;;  %v1671_v62 = vunpack.i.l.bf16 %v1670_v33 }
  0x8f   : > { %1500 = vmatmul.mubr.msk.bf16.vlgmr.msra.gmra.mrb[0].mxu0 %vm264_vm1, %v1498_v27  ;;  %1502 = vmatprep.subr.msk.bf16.mxu0 %vm268_vm0, %v393_v30  ;;  %v398_v34 = vsel %vm268_vm0, %v392_v31, 0  ;;  %v524_v58 = vsel %vm268_vm0, %v518_v55, 0 }
  0x90   : > { %404 = vmatpush1.bf16.msra.mxu0 %v398_v34  ;;  %435 = vmatprep.mubr.bf16.mxu0 %v1732_v0  ;;  %v580_v56 = vsel %vm578_vm7, %v1667_v53, %v1666_v54  ;;  %v579_v60 = vsel %vm578_vm7, %v1666_v54, %v1667_v53  ;;  %v643_v1 = vsel %vm641_vm8, %v1672_v61, %v1671_v62  ;;  %v1526_v53 = vld [vmem:[%s2032_s3 + $0x4] sm:$0xf] }
  0x91   : > { %1505 = vmatprep.subr.msk.bf16.mxu0 %vm268_vm0, %v456_v32  ;;  %v1680_v35 = vpop.permute.xlu1 %1679  ;;  %v582_v59 = vpack.c.bf16 %v580_v56, %v580_v56  ;;  %v581_v63 = vpack.c.bf16 %v579_v60, %v579_v60  ;;  %v645_v4 = vpack.c.bf16 %v643_v1, %v643_v1  ;;  %v1675_v5 = vpop.permute.xlu0 %1674  ;;  %v642_v6 = vsel %vm641_vm8, %v1671_v62, %v1672_v61 }
  0x92   : > { %v1682_v39 = vunpack.i.h.bf16 %v1680_v35  ;;  %v1681_v40 = vunpack.i.l.bf16 %v1680_v35  ;;  %v1677_v7 = vunpack.i.h.bf16 %v1675_v5  ;;  %v1676_v8 = vunpack.i.l.bf16 %v1675_v5  ;;  %v877_v35 = vld [vmem:[%s2032_s3] sm:$0xf] }
  0x93   : > { %v587_v3 = vsel %vm268_vm0, %v581_v63, 0  ;;  %v644_v9 = vpack.c.bf16 %v642_v6, %v642_v6 }
  0x94   : > { %v769_v42 = vsel %vm767_vm5, %v1682_v39, %v1681_v40  ;;  %v768_v43 = vsel %vm767_vm5, %v1681_v40, %v1682_v39  ;;  %v706_v11 = vsel %vm704_vm9, %v1677_v7, %v1676_v8  ;;  %v705_v15 = vsel %vm704_vm9, %v1676_v8, %v1677_v7 }
  0x95   : > { %v771_v45 = vpack.c.bf16 %v769_v42, %v769_v42  ;;  %v770_v46 = vpack.c.bf16 %v768_v43, %v768_v43  ;;  %v650_v13 = vsel %vm268_vm0, %v644_v9, 0  ;;  %v708_v14 = vpack.c.bf16 %v706_v11, %v706_v11 }
  0x96   : > { %v707_v16 = vpack.c.bf16 %v705_v15, %v705_v15 }
  0x97   : > { %1522 = vmatprep.subr.msk.bf16.mxu1 %vm268_vm0, %v771_v45  ;;  %v776_v48 = vsel %vm268_vm0, %v770_v46, 0 }
  0x98   : > { %837 = vmatpush1.bf16.msra.mxu1 %v776_v48  ;;  %v713_v18 = vsel %vm268_vm0, %v707_v16, 0 }
  0x9b   : > { %1503 = vmatmul.mubr.msk.bf16.vlgmr.msra.gmra.mrb[0].mxu0 %vm264_vm1, %v1501_v47  ;;  %1523 = vmatmul.mubr.msk.bf16.vlgmr.msra.gmra.mrb[0].mxu1 %vm264_vm1, %v826_v21  ;;  %v1535_v21 = vld [vmem:[%s2032_s3 + $0x10] sm:$0xf] }
  0x9c   : > { %467 = vmatpush1.bf16.msra.mxu0 %v461_v49  ;;  %498 = vmatprep.mubr.bf16.mxu0 %v1732_v0 }
  0x9d   : > { %1508 = vmatprep.subr.msk.bf16.mxu0 %vm268_vm0, %v519_v50  ;;  %921 = vmatprep.mubr.bf16.mxu1 %v1732_v0 }
  0xa2   : > { %v259_v22 = vpop.permute.xlu0 %258 }
  0xa7   : > { %1506 = vmatmul.mubr.msk.bf16.vlgmr.msra.gmra.mrb[0].mxu0 %vm264_vm1, %v1504_v57 }
  0xa8   : > { %530 = vmatpush1.bf16.msra.mxu0 %v524_v58  ;;  %561 = vmatprep.mubr.bf16.mxu0 %v1732_v0 }
  0xa9   : > { %1511 = vmatprep.subr.msk.bf16.mxu0 %vm268_vm0, %v582_v59 }
  0xb3   : > { %1509 = vmatmul.mubr.msk.bf16.vlgmr.msra.gmra.mrb[0].mxu0 %vm264_vm1, %v1507_v2  ;;  %v1529_v2 = vld [vmem:[%s2032_s3 + $0x8] sm:$0xf] }
  0xb4   : > { %593 = vmatpush1.bf16.msra.mxu0 %v587_v3  ;;  %624 = vmatprep.mubr.bf16.mxu0 %v1732_v0 }
  0xb5   : > { %1514 = vmatprep.subr.msk.bf16.mxu0 %vm268_vm0, %v645_v4 }
  0xbf   : > { %1512 = vmatmul.mubr.msk.bf16.vlgmr.msra.gmra.mrb[0].mxu0 %vm264_vm1, %v1510_v12  ;;  %v1532_v12 = vld [vmem:[%s2032_s3 + $0xc] sm:$0xf] }
  0xc0   : > { %656 = vmatpush1.bf16.msra.mxu0 %v650_v13  ;;  %687 = vmatprep.mubr.bf16.mxu0 %v1732_v0 }
  0xc1   : > { %1517 = vmatprep.subr.msk.bf16.mxu0 %vm268_vm0, %v708_v14 }
  0xcb   : > { %1515 = vmatmul.mubr.msk.bf16.vlgmr.msra.gmra.mrb[0].mxu0 %vm264_vm1, %v1513_v17 }
  0xcc   : > { %719 = vmatpush1.bf16.msra.mxu0 %v713_v18  ;;  %750 = vmatprep.mubr.bf16.mxu0 %v1732_v0 }
  0xcd   : > { %1520 = vmatprep.subr.msk.bf16.mxu0 %vm268_vm0, %v771_v45 }
  0xd7   : > { %1518 = vmatmul.mubr.msk.bf16.vlgmr.msra.gmra.mrb[0].mxu0 %vm264_vm1, %v1516_v19 }
  0xd8   : > { %782 = vmatpush1.bf16.msra.mxu0 %v776_v48  ;;  %813 = vmatprep.mubr.bf16.mxu0 %v1732_v0 }
  0xe3   : > { %1521 = vmatmul.mubr.msk.bf16.vlgmr.msra.gmra.mrb[0].mxu0 %vm264_vm1, %v1519_v20 }
 0x1b6   : > { %v815_v23 = vpop.f32.mrb[0].mxu0 }
 0x1b7   : > { %v1554_v24 = vadd.f32 %v815_v23, %v259_v22  ;;  %v817_v25 = vpop.f32.mrb[1].mxu0 }
 0x1b8   : > { %v1555_v26 = vadd.f32 %v817_v25, %v259_v22  ;;  %v819_v27 = vpop.f32.mrb[2].mxu0 }
 0x1b9   : > { %v824_v28 = vmax.f32 %v1554_v24, 0.0  ;;  %v820_v29 = vpop.f32.mrb[3].mxu0 }
 0x1ba   : > { %v825_v30 = vmax.f32 %v1555_v26, 0.0 }
 0x1bb   : > { %v878_v31 = vpack.c.bf16 %v824_v28, %v824_v28 }
 0x1bc   : > { %v1694_v32 = vpack.i.bf16 %v825_v30, %v824_v28  ;;  %v879_v33 = vpack.c.bf16 %v825_v30, %v825_v30  ;;  %v1538_v30 = vld [vmem:[%s2032_s3 + $0x14] sm:$0xf] }
 0x1bd   : > { %v884_v34 = vsel %vm268_vm0, %v878_v31, 0 }
 0x1be   : > { %1695 = vrot.lane.b32.xlu0 %v1694_v32, %s1734_s28  ;;  %1685 = vrot.lane.b32.xlu1 %v1694_v32, %s1733_s27 }
 0x1bf   : > { %1524 = vmatprep.subr.msk.bf16.mxu1 %vm268_vm0, %v879_v33 }
 0x1c0   : > { %890 = vmatpush1.bf16.msra.mxu1 %v884_v34 }
 0x1c2   : > { %1705 = vrot.lane.b32.xlu0 %v1694_v32, %s1737_s9  ;;  %1690 = vrot.lane.b32.xlu1 %v1694_v32, %s1735_s7 }
 0x1c3   : > { %1525 = vmatmul.mubr.msk.bf16.vlgmr.msra.gmra.mrb[0].mxu1 %vm264_vm1, %v877_v35 }
 0x1c4   : > { %983 = vmatprep.mubr.bf16.mxu1 %v1732_v0 }
 0x1c6   : > { %1715 = vrot.lane.b32.xlu0 %v1694_v32, %s1739_s11  ;;  %1700 = vrot.lane.b32.xlu1 %v1694_v32, %s1736_s8 }
 0x1ca   : > { %830 = vperm.xlu0 %1683, %v827_v36   ;;  %1710 = vrot.lane.b32.xlu1 %v1694_v32, %s1738_s10 }
 0x1ce   : > { %1720 = vrot.lane.b32.xlu1 %v1694_v32, %s1740_s12 }
 0x230   : > { %v1696_v37 = vpop.permute.xlu0 %1695  ;;  %v1686_v38 = vpop.permute.xlu1 %1685 }
 0x231   : > { %v1688_v39 = vunpack.i.h.bf16 %v1686_v38  ;;  %v1687_v40 = vunpack.i.l.bf16 %v1686_v38  ;;  %v1698_v41 = vunpack.i.h.bf16 %v1696_v37  ;;  %v1697_v42 = vunpack.i.l.bf16 %v1696_v37 }
 0x233   : > { %v939_v43 = vsel %vm326_vm2, %v1688_v39, %v1687_v40  ;;  %v938_v44 = vsel %vm326_vm2, %v1687_v40, %v1688_v39  ;;  %v1063_v51 = vsel %vm452_vm3, %v1698_v41, %v1697_v42  ;;  %v1062_v62 = vsel %vm452_vm3, %v1697_v42, %v1698_v41  ;;  %v1541_v39 = vld [vmem:[%s2032_s3 + $0x18] sm:$0xf] }
 0x234   : > { %v941_v45 = vpack.c.bf16 %v939_v43, %v939_v43  ;;  %v1691_v46 = vpop.permute.xlu1 %1690  ;;  %v940_v47 = vpack.c.bf16 %v938_v44, %v938_v44  ;;  %v1065_v57 = vpack.c.bf16 %v1063_v51, %v1063_v51  ;;  %v1064_v63 = vpack.c.bf16 %v1062_v62, %v1062_v62  ;;  %v1706_v5 = vpop.permute.xlu0 %1705  ;;  %v1544_v44 = vld [vmem:[%s2032_s3 + $0x1c] sm:$0xf] }
 0x235   : > { %v1693_v48 = vunpack.i.h.bf16 %v1691_v46  ;;  %v1692_v49 = vunpack.i.l.bf16 %v1691_v46  ;;  %v1708_v6 = vunpack.i.h.bf16 %v1706_v5  ;;  %v1707_v7 = vunpack.i.l.bf16 %v1706_v5  ;;  %v1547_v46 = vld [vmem:[%s2032_s3 + $0x20] sm:$0xf] }
 0x236   : > { %1527 = vmatprep.subr.msk.bf16.mxu1 %vm268_vm0, %v941_v45  ;;  %v946_v50 = vsel %vm268_vm0, %v940_v47, 0  ;;  %v1070_v4 = vsel %vm268_vm0, %v1064_v63, 0 }
 0x237   : > { %v1001_v52 = vsel %vm389_vm4, %v1693_v48, %v1692_v49  ;;  %952 = vmatpush1.bf16.msra.mxu1 %v946_v50  ;;  %v1000_v54 = vsel %vm389_vm4, %v1692_v49, %v1693_v48  ;;  %v1187_v11 = vsel %vm578_vm7, %v1708_v6, %v1707_v7  ;;  %v1186_v18 = vsel %vm578_vm7, %v1707_v7, %v1708_v6 }
 0x238   : > { %v1003_v55 = vpack.c.bf16 %v1001_v52, %v1001_v52  ;;  %v1002_v56 = vpack.c.bf16 %v1000_v54, %v1000_v54  ;;  %v1701_v59 = vpop.permute.xlu1 %1700  ;;  %v1189_v13 = vpack.c.bf16 %v1187_v11, %v1187_v11  ;;  %v1188_v19 = vpack.c.bf16 %v1186_v18, %v1186_v18  ;;  %v1716_v24 = vpop.permute.xlu0 %1715 }
 0x239   : > { %v1703_v60 = vunpack.i.h.bf16 %v1701_v59  ;;  %v1702_v61 = vunpack.i.l.bf16 %v1701_v59  ;;  %v1718_v25 = vunpack.i.h.bf16 %v1716_v24  ;;  %v1717_v26 = vunpack.i.l.bf16 %v1716_v24 }
 0x23a   : > { %1528 = vmatmul.mubr.msk.bf16.vlgmr.msra.gmra.mrb[0].mxu1 %vm264_vm1, %v1526_v53  ;;  %1530 = vmatprep.subr.msk.bf16.mxu1 %vm268_vm0, %v1003_v55  ;;  %v1008_v58 = vsel %vm268_vm0, %v1002_v56, 0  ;;  %v1194_v23 = vsel %vm268_vm0, %v1188_v19, 0 }
 0x23b   : > { %1014 = vmatpush1.bf16.msra.mxu1 %v1008_v58  ;;  %1045 = vmatprep.mubr.bf16.mxu1 %v1732_v0  ;;  %v1125_v1 = vsel %vm515_vm6, %v1703_v60, %v1702_v61  ;;  %v1124_v8 = vsel %vm515_vm6, %v1702_v61, %v1703_v60  ;;  %v1311_v29 = vsel %vm704_vm9, %v1718_v25, %v1717_v26 }
 0x23c   : > { %1533 = vmatprep.subr.msk.bf16.mxu1 %vm268_vm0, %v1065_v57  ;;  %v1127_v3 = vpack.c.bf16 %v1125_v1, %v1125_v1  ;;  %v1126_v9 = vpack.c.bf16 %v1124_v8, %v1124_v8  ;;  %v1711_v15 = vpop.permute.xlu1 %1710  ;;  %v1313_v31 = vpack.c.bf16 %v1311_v29, %v1311_v29  ;;  %v1310_v36 = vsel %vm704_vm9, %v1717_v26, %v1718_v25 }
 0x23d   : > { %v1713_v16 = vunpack.i.h.bf16 %v1711_v15  ;;  %v1712_v17 = vunpack.i.l.bf16 %v1711_v15  ;;  %v1312_v37 = vpack.c.bf16 %v1310_v36, %v1310_v36 }
 0x23e   : > { %v1132_v14 = vsel %vm268_vm0, %v1126_v9, 0 }
 0x23f   : > { %v1249_v20 = vsel %vm641_vm8, %v1713_v16, %v1712_v17  ;;  %v1248_v27 = vsel %vm641_vm8, %v1712_v17, %v1713_v16  ;;  %v1318_v41 = vsel %vm268_vm0, %v1312_v37, 0 }
 0x240   : > { %v1251_v22 = vpack.c.bf16 %v1249_v20, %v1249_v20  ;;  %v1250_v28 = vpack.c.bf16 %v1248_v27, %v1248_v27  ;;  %v1721_v33 = vpop.permute.xlu1 %1720 }
 0x241   : > { %v1723_v34 = vunpack.i.h.bf16 %v1721_v33  ;;  %v1722_v35 = vunpack.i.l.bf16 %v1721_v33 }
 0x242   : > { %v1256_v32 = vsel %vm268_vm0, %v1250_v28, 0 }
 0x243   : > { %v1373_v38 = vsel %vm767_vm5, %v1723_v34, %v1722_v35  ;;  %v1372_v42 = vsel %vm767_vm5, %v1722_v35, %v1723_v34 }
 0x244   : > { %v1375_v40 = vpack.c.bf16 %v1373_v38, %v1373_v38  ;;  %v1374_v43 = vpack.c.bf16 %v1372_v42, %v1372_v42 }
 0x246   : > { %1531 = vmatmul.mubr.msk.bf16.vlgmr.msra.gmra.mrb[0].mxu1 %vm264_vm1, %v1529_v2  ;;  %v1380_v45 = vsel %vm268_vm0, %v1374_v43, 0 }
 0x247   : > { %1076 = vmatpush1.bf16.msra.mxu1 %v1070_v4  ;;  %1107 = vmatprep.mubr.bf16.mxu1 %v1732_v0 }
 0x248   : > { %1536 = vmatprep.subr.msk.bf16.mxu1 %vm268_vm0, %v1127_v3 }
 0x249   : > { %v831_v10 = vpop.permute.xlu0 %830 }
 0x252   : > { %1534 = vmatmul.mubr.msk.bf16.vlgmr.msra.gmra.mrb[0].mxu1 %vm264_vm1, %v1532_v12 }
 0x253   : > { %1138 = vmatpush1.bf16.msra.mxu1 %v1132_v14  ;;  %1169 = vmatprep.mubr.bf16.mxu1 %v1732_v0 }
 0x254   : > { %1539 = vmatprep.subr.msk.bf16.mxu1 %vm268_vm0, %v1189_v13 }
 0x25e   : > { %1537 = vmatmul.mubr.msk.bf16.vlgmr.msra.gmra.mrb[0].mxu1 %vm264_vm1, %v1535_v21 }
 0x25f   : > { %1200 = vmatpush1.bf16.msra.mxu1 %v1194_v23  ;;  %1231 = vmatprep.mubr.bf16.mxu1 %v1732_v0 }
 0x260   : > { %1542 = vmatprep.subr.msk.bf16.mxu1 %vm268_vm0, %v1251_v22 }
 0x26a   : > { %1540 = vmatmul.mubr.msk.bf16.vlgmr.msra.gmra.mrb[0].mxu1 %vm264_vm1, %v1538_v30 }
 0x26b   : > { %1262 = vmatpush1.bf16.msra.mxu1 %v1256_v32  ;;  %1293 = vmatprep.mubr.bf16.mxu1 %v1732_v0 }
 0x26c   : > { %1545 = vmatprep.subr.msk.bf16.mxu1 %vm268_vm0, %v1313_v31 }
 0x276   : > { %1543 = vmatmul.mubr.msk.bf16.vlgmr.msra.gmra.mrb[0].mxu1 %vm264_vm1, %v1541_v39 }
 0x277   : > { %1324 = vmatpush1.bf16.msra.mxu1 %v1318_v41  ;;  %1355 = vmatprep.mubr.bf16.mxu1 %v1732_v0 }
 0x278   : > { %1548 = vmatprep.subr.msk.bf16.mxu1 %vm268_vm0, %v1375_v40 }
 0x282   : > { %1546 = vmatmul.mubr.msk.bf16.vlgmr.msra.gmra.mrb[0].mxu1 %vm264_vm1, %v1544_v44 }
 0x283   : > { %1386 = vmatpush1.bf16.msra.mxu1 %v1380_v45  ;;  %1417 = vmatprep.mubr.bf16.mxu1 %v1732_v0 }
 0x28e   : > { %1549 = vmatmul.mubr.msk.bf16.vlgmr.msra.gmra.mrb[0].mxu1 %vm264_vm1, %v1547_v46 }
 0x361   : > { %v1419_v47 = vpop.f32.mrb[0].mxu1 }
 0x362   : > { %v1556_v48 = vadd.f32 %v1419_v47, %v831_v10  ;;  %v1421_v49 = vpop.f32.mrb[1].mxu1 }
 0x363   : > { %v1557_v50 = vadd.f32 %v1421_v49, %v831_v10  ;;  %v1423_v51 = vpop.f32.mrb[2].mxu1 }
 0x364   : > { %v1428_v52 = vmax.f32 %v1556_v48, 0.0  ;;  %v1424_v53 = vpop.f32.mrb[3].mxu1 }
 0x365   : > { %v1429_v0 = vmax.f32 %v1557_v50, 0.0 }
 0x366   : > { %1430 = vst [vmem:[%s251_s24] sm:$0xff] %v1428_v52 }
 0x367   : > { %1431 = vst [vmem:[%s251_s24 + $0x8] sm:$0xff] %v1429_v0 }
 0x368 PF: > { %s16_s21 = sadd.s32 1, %s1730_s21  }
 0x369   : > { %p13_p4 = scmp.ge.s32.totalorder %s16_s21, 4  }
 0x36b   :  { %15 = sbr.rel (!%p13_p4) target bundleno = 1 (0x1), region = 90 }

</bundles_post_ra>
